<compile_context>
chip_gen: v5e
topology: v5e:2x2
jax: 0.10.0
libtpu: 0.0.40
codegen_flags: <defaults>
</compile_context>

<pallas_src>
import jax
import jax.numpy as jnp
from jax.experimental import pallas as pl
from jax.experimental.pallas import tpu as pltpu


# ----------------------------------------------------------------------------
# Tiled MXU matmul kernels (f32 accumulation -> out dtype)
#   * _mm_*_single: K fits in one tile -> write jnp.dot straight to the output
#     (no accumulator scratch, no init/finalize passes).
#   * _mm_*_acc:    K-grid > 1 -> classic accumulator with pl.when init/store.
#   * *_nt variants contract the LAST dims of both operands (B given as (N, K)),
#     so e.g. W_dis @ embedding^T never materialises embedding.T in HBM.
# ----------------------------------------------------------------------------
def _mm_nn_single_kernel(a_ref, b_ref, o_ref):
    o_ref[...] = jnp.dot(a_ref[...], b_ref[...],
                         preferred_element_type=jnp.float32).astype(o_ref.dtype)


def _mm_nn_acc_kernel(a_ref, b_ref, o_ref, acc_ref):
    @pl.when(pl.program_id(2) == 0)
    def _():
        acc_ref[...] = jnp.zeros_like(acc_ref)

    acc_ref[...] += jnp.dot(a_ref[...], b_ref[...],
                            preferred_element_type=jnp.float32)

    @pl.when(pl.program_id(2) == pl.num_programs(2) - 1)
    def _():
        o_ref[...] = acc_ref[...].astype(o_ref.dtype)


def _mm_nt_single_kernel(a_ref, b_ref, o_ref):
    o_ref[...] = jax.lax.dot_general(
        a_ref[...], b_ref[...], (((1,), (1,)), ((), ())),
        preferred_element_type=jnp.float32).astype(o_ref.dtype)


def _mm_nt_acc_kernel(a_ref, b_ref, o_ref, acc_ref):
    @pl.when(pl.program_id(2) == 0)
    def _():
        acc_ref[...] = jnp.zeros_like(acc_ref)

    acc_ref[...] += jax.lax.dot_general(
        a_ref[...], b_ref[...], (((1,), (1,)), ((), ())),
        preferred_element_type=jnp.float32)

    @pl.when(pl.program_id(2) == pl.num_programs(2) - 1)
    def _():
        o_ref[...] = acc_ref[...].astype(o_ref.dtype)


def tiled_matmul(a, b, out_dtype=jnp.float32, *, trans_b=False,
                 tm=512, tn=512, tk=512):
    """[M, K] @ [K, N] (or @ [N, K]^T when trans_b) with MXU-friendly tiles.

    M / N edges are handled with cdiv grids (partial edge blocks are never
    written back), so only the reduction axis is (zero-)padded when needed.
    """
    M, K = a.shape
    if trans_b:
        N, Kb = b.shape
    else:
        Kb, N = b.shape
    assert K == Kb
    tm, tn, tk = min(tm, M), min(tn, N), min(tk, K)

    pad_k = (-K) % tk
    if pad_k:  # zeros contribute nothing to the accumulation -> exact
        a = jnp.pad(a, ((0, 0), (0, pad_k)))
        b = jnp.pad(b, ((0, 0), (0, pad_k)) if trans_b else ((0, pad_k), (0, 0)))
    nk = (K + pad_k) // tk
    grid = (pl.cdiv(M, tm), pl.cdiv(N, tn), nk)

    a_spec = pl.BlockSpec((tm, tk), lambda i, j, k: (i, k))
    if trans_b:
        b_spec = pl.BlockSpec((tn, tk), lambda i, j, k: (j, k))
    else:
        b_spec = pl.BlockSpec((tk, tn), lambda i, j, k: (k, j))
    o_spec = pl.BlockSpec((tm, tn), lambda i, j, k: (i, j))

    if nk == 1:
        kernel = _mm_nt_single_kernel if trans_b else _mm_nn_single_kernel
        scratch = []
    else:
        kernel = _mm_nt_acc_kernel if trans_b else _mm_nn_acc_kernel
        scratch = [pltpu.VMEM((tm, tn), jnp.float32)]

    return pl.pallas_call(
        kernel,
        out_shape=jax.ShapeDtypeStruct((M, N), out_dtype),
        grid=grid,
        in_specs=[a_spec, b_spec],
        out_specs=o_spec,
        scratch_shapes=scratch,
        compiler_params=pltpu.CompilerParams(
            dimension_semantics=("parallel", "parallel", "arbitrary")),
    )(a, b)


# ----------------------------------------------------------------------------
# Fused MutualAttention (T1 = H1@W fused in) + top-k + generator head.
# One batch tile per grid step ("parallel" axis).
# ----------------------------------------------------------------------------
def _attention_generator_kernel(h1_ref, h2_ref, w_ref, m1_ref, m2_ref, b_ref,
                                w1_ref, b1_ref, w2_ref, b2_ref, probs_ref):
    # h1_ref: (B, L1, H) bf16, h2_ref: (B, L2, H) bf16, w_ref: (H, H) bf16
    # m1_ref: (B, L1) f32, m2_ref: (B, L2) f32  (0.0 == valid token, eq(0))
    # b_ref : (1, 1) f32 scalar in SMEM
    # generator params: w1 (K,K), b1 (1,K), w2 (2,K), b2 (1,2)  (all f32)
    B, L1, H = h1_ref.shape
    L2 = h2_ref.shape[1]
    K = w1_ref.shape[0]
    neg_inf = jnp.float32(-jnp.inf)

    # Fused T1 = H1 @ W_att (bf16 MXU, f32 acc) — no HBM round-trip of T1.
    t1 = jnp.dot(h1_ref[...].reshape(B * L1, H), w_ref[...],
                 preferred_element_type=jnp.float32)
    t1 = t1.astype(jnp.bfloat16).reshape(B, L1, H)

    # S = relu(T1 @ H2^T + b) — leading-batch einsum, f32 accumulation.
    s = jnp.einsum("blh,bmh->blm", t1, h2_ref[...],
                   preferred_element_type=jnp.float32)          # (B, L1, L2)
    s = jnp.maximum(s + b_ref[0, 0], 0.0)

    # pad-pair keep mask built in-kernel from lane-dense 2D masks (VPU compare)
    keep = (m1_ref[...][:, :, None] == 0.0) & (m2_ref[...][:, None, :] == 0.0)
    s = jnp.where(keep, s, neg_inf)

    # top-k over the flattened (L1*L2) similarities, vectorized over the batch
    # tile.  One full (B,L1,L2) reduction per extraction: every occurrence of
    # the current max is knocked out at once.  ReLU'd scores only tie at 0.0 or
    # -inf in practice, for which the emitted values match torch.topk exactly
    # (positive ties are measure-zero with continuous inputs).
    n = L1 * L2
    k_actual = min(K, n)
    col = jax.lax.broadcasted_iota(jnp.int32, (B, K), 1)

    def body(i, carry):
        s_cur, q = carry
        m = jnp.max(jnp.max(s_cur, axis=2, keepdims=True),
                    axis=1, keepdims=True)                       # (B, 1, 1)
        q = jnp.where(col == i, m[:, 0, :], q)
        s_cur = jnp.where(s_cur == m, neg_inf, s_cur)
        return s_cur, q

    q0 = jnp.full((B, K), neg_inf, dtype=jnp.float32)
    _, q = jax.lax.fori_loop(0, k_actual, body, (s, q0), unroll=True)

    # back-fill -inf slots with the last finite top-k value (per batch row);
    # matches the PyTorch masked_fill_ loop since relu'd scores are >= 0.
    in_topk = col < k_actual
    num_ninf = jnp.sum(jnp.where(in_topk & (q == neg_inf), 1, 0),
                       axis=1, keepdims=True)                    # (B, 1)
    fill_idx = jnp.maximum(k_actual - num_ninf - 1, 0)           # (B, 1)
    fill_val = jnp.sum(jnp.where(col == fill_idx, q, 0.0),
                       axis=1, keepdims=True)                    # (B, 1)
    q = jnp.where(in_topk & (q == neg_inf), fill_val, q)

    if k_actual < K:   # pad result[:, k_actual:] with the last top-k value
        last = jnp.sum(jnp.where(col == (k_actual - 1), q, 0.0),
                       axis=1, keepdims=True)
        q = jnp.where(in_topk, q, last)

    # fused generator: Linear(K,K) -> ReLU -> Dropout(eval=identity)
    #                  -> Linear(K,2) -> Softmax (exact; it is only (B,2))
    h = jax.lax.dot_general(q, w1_ref[...], (((1,), (1,)), ((), ())),
                            preferred_element_type=jnp.float32) + b1_ref[...]
    h = jnp.maximum(h, 0.0)
    logits = jax.lax.dot_general(h, w2_ref[...], (((1,), (1,)), ((), ())),
                                 preferred_element_type=jnp.float32) + b2_ref[...]
    mmax = jnp.max(logits, axis=-1, keepdims=True)
    e = jnp.exp(logits - mmax)
    probs_ref[...] = e / jnp.sum(e, axis=-1, keepdims=True)


def mutual_attention_generator(h1, h2, w_att, mask1, mask2, b_att,
                               gen_w1, gen_b1, gen_w2, gen_b2, k):
    bsz, L1, H = h1.shape
    L2 = h2.shape[1]
    # batch tile: whole batch when small; 8-row tiles once bsz >= 16 so the
    # "parallel" batch axis has >= 2 grid steps (dual TensorCore on v7x).
    b_tile = 8 if (bsz >= 16 and bsz % 8 == 0) else bsz
    b2d = jnp.asarray(b_att, jnp.float32).reshape(1, 1)
    # TODO(synk): for long sequences on v7x (64 MiB VMEM) tile L2 and merge
    #             partial top-k results instead of holding a full (B, L1, L2)
    #             score tile; not needed at these shapes.
    return pl.pallas_call(
        _attention_generator_kernel,
        out_shape=jax.ShapeDtypeStruct((bsz, 2), jnp.float32),
        grid=(bsz // b_tile,),
        in_specs=[
            pl.BlockSpec((b_tile, L1, H), lambda i: (i, 0, 0)),
            pl.BlockSpec((b_tile, L2, H), lambda i: (i, 0, 0)),
            pl.BlockSpec((H, H), lambda i: (0, 0)),              # W_att broadcast
            pl.BlockSpec((b_tile, L1), lambda i: (i, 0)),        # lane-dense masks
            pl.BlockSpec((b_tile, L2), lambda i: (i, 0)),
            pl.BlockSpec(memory_space=pltpu.MemorySpace.SMEM),   # scalar bias
            pl.BlockSpec((k, k), lambda i: (0, 0)),
            pl.BlockSpec((1, k), lambda i: (0, 0)),
            pl.BlockSpec((2, k), lambda i: (0, 0)),
            pl.BlockSpec((1, 2), lambda i: (0, 0)),
        ],
        out_specs=pl.BlockSpec((b_tile, 2), lambda i: (i, 0)),
        compiler_params=pltpu.CompilerParams(
            dimension_semantics=("parallel",)),
    )(h1, h2, w_att,
      mask1.astype(jnp.float32), mask2.astype(jnp.float32), b2d,
      gen_w1.astype(jnp.float32), gen_b1.reshape(1, k).astype(jnp.float32),
      gen_w2.astype(jnp.float32), gen_b2.reshape(1, 2).astype(jnp.float32))


# ----------------------------------------------------------------------------
# Synthetic encoder (glue, plain JAX) + PhraseSim forward
# ----------------------------------------------------------------------------
def encoder_forward(params, seq):
    """seq: (L, bsz) int32, PAD id == 0.  Emits LEN-MAJOR outputs (PyTorch
    convention) so the logits matmul consumes len-major rows and the final
    reshape to (L, bsz, V) is free."""
    emb = params["embedding"][seq]                    # (L, bsz, H)
    outputs = jnp.tanh(emb @ params["w_enc"])         # (L, bsz, H)
    hidden = jnp.mean(outputs, axis=0)                # (bsz, H)
    mask = (seq == 0).astype(jnp.float32)             # (L, bsz); 0.0 == valid
    return outputs, hidden, mask


def phrase_sim_forward(params, seq1, seq2, k):
    out1, _, mask1 = encoder_forward(params, seq1)    # (L1, bsz, H)
    out2, _, mask2 = encoder_forward(params, seq2)    # (L2, bsz, H)
    L1, bsz, H = out1.shape
    L2 = out2.shape[0]
    V = params["embedding"].shape[0]

    # MutualAttention + generator: only the SMALL (bsz, L, H) activations are
    # transposed to batch-major (cheap, ~V/H x less data than the logits).
    h1_bm = jnp.transpose(out1, (1, 0, 2)).astype(jnp.bfloat16)
    h2_bm = jnp.transpose(out2, (1, 0, 2)).astype(jnp.bfloat16)
    probs = mutual_attention_generator(
        h1_bm, h2_bm, params["W_att"].astype(jnp.bfloat16),
        mask1.T, mask2.T, params["b_att"],
        params["gen_w1"], params["gen_b1"], params["gen_w2"], params["gen_b2"],
        k)

    # logits: hoist M = W_dis @ we^T ONCE (bidirection == False) via the
    # trans_b path (no embedding.T materialised), f32 inputs / f32 acc, rounded
    # once to bf16 for the big logits matmul (accepting ~bf16-level drift).
    m_proj = tiled_matmul(params["W_dis"], params["embedding"],
                          out_dtype=jnp.bfloat16, trans_b=True)     # (H, V)
    x1 = out1.reshape(L1 * bsz, H).astype(jnp.bfloat16)   # len-major rows
    x2 = out2.reshape(L2 * bsz, H).astype(jnp.bfloat16)
    logits1 = tiled_matmul(x1, m_proj).reshape(L1, bsz, V)   # free reshape
    logits2 = tiled_matmul(x2, m_proj).reshape(L2, bsz, V)   # no HBM transpose
    return probs, logits1, logits2


# ----------------------------------------------------------------------------
# Deterministic parameter / input construction and run
# ----------------------------------------------------------------------------
def xavier(key, shape):
    fan_in = shape[-1]
    fan_out = shape[-2] if len(shape) > 1 else shape[-1]
    lim = (6.0 / (fan_in + fan_out)) ** 0.5
    return jax.random.uniform(key, shape, jnp.float32, -lim, lim)


if __name__ == "__main__":
    L, BSZ, H, V, K = 8, 2, 32, 128, 8   # V chosen lane-dense (multiple of 128)

    key = jax.random.PRNGKey(0)
    keys = jax.random.split(key, 10)
    params = {
        "embedding": xavier(keys[0], (V, H)),
        "w_enc":     xavier(keys[1], (H, H)),
        "W_att":     xavier(keys[2], (H, H)),
        "b_att":     jnp.zeros((1,), jnp.float32) + 0.1,
        "W_dis":     xavier(keys[3], (H, H)),
        "gen_w1":    xavier(keys[4], (K, K)),
        "gen_b1":    0.01 * jnp.ones((K,), jnp.float32),
        "gen_w2":    xavier(keys[5], (2, K)),
        "gen_b2":    jnp.zeros((2,), jnp.float32),
    }

    seq1 = jax.random.randint(keys[6], (L, BSZ), 1, V, dtype=jnp.int32)
    seq2 = jax.random.randint(keys[7], (L, BSZ), 1, V, dtype=jnp.int32)
    # introduce some padding (token id 0) to exercise the attention mask path
    seq1 = seq1.at[6:, 0].set(0)
    seq2 = seq2.at[5:, 1].set(0)

    probs, logits1, logits2 = phrase_sim_forward(params, seq1, seq2, K)
    jax.block_until_ready((probs, logits1, logits2))

    assert probs.shape == (BSZ, 2)
    assert logits1.shape == (L, BSZ, V)
    assert logits2.shape == (L, BSZ, V)
    assert bool(jnp.all(jnp.isfinite(probs)))
    print("KERNEL_OK")
</pallas_src>

<mosaic_0001>
module attributes {stable_mosaic.version = 11 : i64} {
  func.func @_attention_generator_kernel(%arg0: i32, %arg1: memref<2x8x32xbf16, #tpu.memory_space<vmem>>, %arg2: memref<2x8x32xbf16, #tpu.memory_space<vmem>>, %arg3: memref<32x32xbf16, #tpu.memory_space<vmem>>, %arg4: memref<2x8xf32, #tpu.memory_space<vmem>>, %arg5: memref<2x8xf32, #tpu.memory_space<vmem>>, %arg6: memref<1x1xf32, #tpu.memory_space<smem>>, %arg7: memref<8x8xf32, #tpu.memory_space<vmem>>, %arg8: memref<1x8xf32, #tpu.memory_space<vmem>>, %arg9: memref<2x8xf32, #tpu.memory_space<vmem>>, %arg10: memref<1x2xf32, #tpu.memory_space<vmem>>, %arg11: memref<2x2xf32, #tpu.memory_space<vmem>>) attributes {dimension_semantics = [#tpu.dimension_semantics<parallel>], iteration_bounds = array<i64: 1>, scalar_prefetch = 0 : i64, scratch_operands = 0 : i64, tpu.core_type = #tpu.core_type<tc>, window_params = [{transform_indices = @transform_0, window_bounds = array<i64: 2, 8, 32>}, {transform_indices = @transform_1, window_bounds = array<i64: 2, 8, 32>}, {pipeline_mode = #tpu.pipeline_mode<synchronous>, transform_indices = @transform_2, window_bounds = array<i64: 32, 32>}, {transform_indices = @transform_3, window_bounds = array<i64: 2, 8>}, {transform_indices = @transform_4, window_bounds = array<i64: 2, 8>}, {transform_indices = @transform_5, window_bounds = array<i64: 1, 1>}, {pipeline_mode = #tpu.pipeline_mode<synchronous>, transform_indices = @transform_6, window_bounds = array<i64: 8, 8>}, {pipeline_mode = #tpu.pipeline_mode<synchronous>, transform_indices = @transform_7, window_bounds = array<i64: 1, 8>}, {pipeline_mode = #tpu.pipeline_mode<synchronous>, transform_indices = @transform_8, window_bounds = array<i64: 2, 8>}, {pipeline_mode = #tpu.pipeline_mode<synchronous>, transform_indices = @transform_9, window_bounds = array<i64: 1, 2>}, {transform_indices = @transform_10, window_bounds = array<i64: 2, 2>}]} {
    %c0 = arith.constant 0 : index
    %c0_0 = arith.constant 0 : index
    %c0_1 = arith.constant 0 : index
    %0 = vector.load %arg1[%c0, %c0_0, %c0_1] : memref<2x8x32xbf16, #tpu.memory_space<vmem>>, vector<2x8x32xbf16>
    %1 = vector.shape_cast %0 : vector<2x8x32xbf16> to vector<16x32xbf16>
    %c0_2 = arith.constant 0 : index
    %c0_3 = arith.constant 0 : index
    %2 = vector.load %arg3[%c0_2, %c0_3] : memref<32x32xbf16, #tpu.memory_space<vmem>>, vector<32x32xbf16>
    %cst = arith.constant dense<0.000000e+00> : vector<16x32xf32>
    %3 = tpu.matmul %1, %2, %cst {dimension_numbers = #tpu.dot_dimension_numbers<[1], [0], [0], [1], [0, 0, 1, 1], [], []>} : vector<16x32xbf16>, vector<32x32xbf16>, vector<16x32xf32> -> vector<16x32xf32>
    %4 = arith.truncf %3 : vector<16x32xf32> to vector<16x32xbf16>
    %5 = vector.shape_cast %4 : vector<16x32xbf16> to vector<2x8x32xbf16>
    %c0_4 = arith.constant 0 : index
    %c0_5 = arith.constant 0 : index
    %c0_6 = arith.constant 0 : index
    %6 = vector.load %arg2[%c0_4, %c0_5, %c0_6] : memref<2x8x32xbf16, #tpu.memory_space<vmem>>, vector<2x8x32xbf16>
    "tpu.trace_start"() <{level = 10 : i32, message = "blh,bmh->blm"}> : () -> ()
    %cst_7 = arith.constant dense<0.000000e+00> : vector<2x8x8xf32>
    %7 = tpu.matmul %5, %6, %cst_7 {dimension_numbers = #tpu.dot_dimension_numbers<[2], [2], [1], [1], [0, 0, 0, 1, 1, 1], [0], [0]>} : vector<2x8x32xbf16>, vector<2x8x32xbf16>, vector<2x8x8xf32> -> vector<2x8x8xf32>
    "tpu.trace_stop"() : () -> ()
    %c0_8 = arith.constant 0 : index
    %c0_9 = arith.constant 0 : index
    %8 = memref.load %arg6[%c0_8, %c0_9] : memref<1x1xf32, #tpu.memory_space<smem>>
    %9 = vector.broadcast %8 : f32 to vector<2x8x8xf32>
    %10 = arith.addf %7, %9 : vector<2x8x8xf32>
    %cst_10 = arith.constant 0.000000e+00 : f32
    %11 = vector.broadcast %cst_10 : f32 to vector<2x8x8xf32>
    %12 = arith.maximumf %10, %11 : vector<2x8x8xf32>
    %c0_11 = arith.constant 0 : index
    %c0_12 = arith.constant 0 : index
    %13 = vector.load %arg4[%c0_11, %c0_12] : memref<2x8xf32, #tpu.memory_space<vmem>>, vector<2x8xf32>
    %14 = vector.shape_cast %13 : vector<2x8xf32> to vector<2x8x1xf32>
    %cst_13 = arith.constant 0.000000e+00 : f32
    %15 = vector.broadcast %cst_13 : f32 to vector<2x8x1xf32>
    %16 = arith.cmpf oeq, %14, %15 : vector<2x8x1xf32>
    %c0_14 = arith.constant 0 : index
    %c0_15 = arith.constant 0 : index
    %17 = vector.load %arg5[%c0_14, %c0_15] : memref<2x8xf32, #tpu.memory_space<vmem>>, vector<2x8xf32>
    %18 = vector.shape_cast %17 : vector<2x8xf32> to vector<2x1x8xf32>
    %cst_16 = arith.constant 0.000000e+00 : f32
    %19 = vector.broadcast %cst_16 : f32 to vector<2x1x8xf32>
    %20 = arith.cmpf oeq, %18, %19 : vector<2x1x8xf32>
    %21 = vector.broadcast %16 : vector<2x8x1xi1> to vector<2x8x8xi1>
    %22 = vector.broadcast %20 : vector<2x1x8xi1> to vector<2x8x8xi1>
    %23 = arith.andi %21, %22 : vector<2x8x8xi1>
    %cst_17 = arith.constant 0xFF800000 : f32
    %24 = vector.broadcast %cst_17 : f32 to vector<2x8x8xf32>
    %25 = arith.select %23, %12, %24 : vector<2x8x8xi1>, vector<2x8x8xf32>
    %26 = tpu.iota {dimensions = array<i32: 1>} : vector<2x8xi32>
    %cst_18 = arith.constant 0xFF800000 : f32
    %27 = vector.broadcast %cst_18 : f32 to vector<2x8xf32>
    %cst_19 = arith.constant 0xFF800000 : f32
    %c0_i32 = arith.constant 0 : i32
    %cst_20 = arith.constant dense<0xFF800000> : vector<2x8xf32>
    %28 = vector.multi_reduction <maximumf>, %25, %cst_20 [2] : vector<2x8x8xf32> to vector<2x8xf32>
    %29 = vector.shape_cast %28 : vector<2x8xf32> to vector<2x8x1xf32>
    %cst_21 = arith.constant dense<0xFF800000> : vector<2x1xf32>
    %30 = vector.multi_reduction <maximumf>, %29, %cst_21 [1] : vector<2x8x1xf32> to vector<2x1xf32>
    %31 = vector.shape_cast %30 : vector<2x1xf32> to vector<2x1x1xf32>
    %32 = vector.broadcast %c0_i32 : i32 to vector<2x8xi32>
    %33 = arith.cmpi eq, %26, %32 : vector<2x8xi32>
    %34 = vector.shape_cast %31 : vector<2x1x1xf32> to vector<2x1xf32>
    %35 = vector.shape_cast %34 : vector<2x1xf32> to vector<2x1xf32>
    %36 = vector.broadcast %35 : vector<2x1xf32> to vector<2x8xf32>
    %37 = arith.select %33, %36, %27 : vector<2x8xi1>, vector<2x8xf32>
    %38 = vector.broadcast %31 : vector<2x1x1xf32> to vector<2x8x8xf32>
    %39 = arith.cmpf oeq, %25, %38 : vector<2x8x8xf32>
    %40 = vector.broadcast %cst_19 : f32 to vector<2x8x8xf32>
    %41 = arith.select %39, %40, %25 : vector<2x8x8xi1>, vector<2x8x8xf32>
    %c1_i32 = arith.constant 1 : i32
    %cst_22 = arith.constant dense<0xFF800000> : vector<2x8xf32>
    %42 = vector.multi_reduction <maximumf>, %41, %cst_22 [2] : vector<2x8x8xf32> to vector<2x8xf32>
    %43 = vector.shape_cast %42 : vector<2x8xf32> to vector<2x8x1xf32>
    %cst_23 = arith.constant dense<0xFF800000> : vector<2x1xf32>
    %44 = vector.multi_reduction <maximumf>, %43, %cst_23 [1] : vector<2x8x1xf32> to vector<2x1xf32>
    %45 = vector.shape_cast %44 : vector<2x1xf32> to vector<2x1x1xf32>
    %46 = vector.broadcast %c1_i32 : i32 to vector<2x8xi32>
    %47 = arith.cmpi eq, %26, %46 : vector<2x8xi32>
    %48 = vector.shape_cast %45 : vector<2x1x1xf32> to vector<2x1xf32>
    %49 = vector.shape_cast %48 : vector<2x1xf32> to vector<2x1xf32>
    %50 = vector.broadcast %49 : vector<2x1xf32> to vector<2x8xf32>
    %51 = arith.select %47, %50, %37 : vector<2x8xi1>, vector<2x8xf32>
    %52 = vector.broadcast %45 : vector<2x1x1xf32> to vector<2x8x8xf32>
    %53 = arith.cmpf oeq, %41, %52 : vector<2x8x8xf32>
    %54 = vector.broadcast %cst_19 : f32 to vector<2x8x8xf32>
    %55 = arith.select %53, %54, %41 : vector<2x8x8xi1>, vector<2x8x8xf32>
    %c2_i32 = arith.constant 2 : i32
    %cst_24 = arith.constant dense<0xFF800000> : vector<2x8xf32>
    %56 = vector.multi_reduction <maximumf>, %55, %cst_24 [2] : vector<2x8x8xf32> to vector<2x8xf32>
    %57 = vector.shape_cast %56 : vector<2x8xf32> to vector<2x8x1xf32>
    %cst_25 = arith.constant dense<0xFF800000> : vector<2x1xf32>
    %58 = vector.multi_reduction <maximumf>, %57, %cst_25 [1] : vector<2x8x1xf32> to vector<2x1xf32>
    %59 = vector.shape_cast %58 : vector<2x1xf32> to vector<2x1x1xf32>
    %60 = vector.broadcast %c2_i32 : i32 to vector<2x8xi32>
    %61 = arith.cmpi eq, %26, %60 : vector<2x8xi32>
    %62 = vector.shape_cast %59 : vector<2x1x1xf32> to vector<2x1xf32>
    %63 = vector.shape_cast %62 : vector<2x1xf32> to vector<2x1xf32>
    %64 = vector.broadcast %63 : vector<2x1xf32> to vector<2x8xf32>
    %65 = arith.select %61, %64, %51 : vector<2x8xi1>, vector<2x8xf32>
    %66 = vector.broadcast %59 : vector<2x1x1xf32> to vector<2x8x8xf32>
    %67 = arith.cmpf oeq, %55, %66 : vector<2x8x8xf32>
    %68 = vector.broadcast %cst_19 : f32 to vector<2x8x8xf32>
    %69 = arith.select %67, %68, %55 : vector<2x8x8xi1>, vector<2x8x8xf32>
    %c3_i32 = arith.constant 3 : i32
    %cst_26 = arith.constant dense<0xFF800000> : vector<2x8xf32>
    %70 = vector.multi_reduction <maximumf>, %69, %cst_26 [2] : vector<2x8x8xf32> to vector<2x8xf32>
    %71 = vector.shape_cast %70 : vector<2x8xf32> to vector<2x8x1xf32>
    %cst_27 = arith.constant dense<0xFF800000> : vector<2x1xf32>
    %72 = vector.multi_reduction <maximumf>, %71, %cst_27 [1] : vector<2x8x1xf32> to vector<2x1xf32>
    %73 = vector.shape_cast %72 : vector<2x1xf32> to vector<2x1x1xf32>
    %74 = vector.broadcast %c3_i32 : i32 to vector<2x8xi32>
    %75 = arith.cmpi eq, %26, %74 : vector<2x8xi32>
    %76 = vector.shape_cast %73 : vector<2x1x1xf32> to vector<2x1xf32>
    %77 = vector.shape_cast %76 : vector<2x1xf32> to vector<2x1xf32>
    %78 = vector.broadcast %77 : vector<2x1xf32> to vector<2x8xf32>
    %79 = arith.select %75, %78, %65 : vector<2x8xi1>, vector<2x8xf32>
    %80 = vector.broadcast %73 : vector<2x1x1xf32> to vector<2x8x8xf32>
    %81 = arith.cmpf oeq, %69, %80 : vector<2x8x8xf32>
    %82 = vector.broadcast %cst_19 : f32 to vector<2x8x8xf32>
    %83 = arith.select %81, %82, %69 : vector<2x8x8xi1>, vector<2x8x8xf32>
    %c4_i32 = arith.constant 4 : i32
    %cst_28 = arith.constant dense<0xFF800000> : vector<2x8xf32>
    %84 = vector.multi_reduction <maximumf>, %83, %cst_28 [2] : vector<2x8x8xf32> to vector<2x8xf32>
    %85 = vector.shape_cast %84 : vector<2x8xf32> to vector<2x8x1xf32>
    %cst_29 = arith.constant dense<0xFF800000> : vector<2x1xf32>
    %86 = vector.multi_reduction <maximumf>, %85, %cst_29 [1] : vector<2x8x1xf32> to vector<2x1xf32>
    %87 = vector.shape_cast %86 : vector<2x1xf32> to vector<2x1x1xf32>
    %88 = vector.broadcast %c4_i32 : i32 to vector<2x8xi32>
    %89 = arith.cmpi eq, %26, %88 : vector<2x8xi32>
    %90 = vector.shape_cast %87 : vector<2x1x1xf32> to vector<2x1xf32>
    %91 = vector.shape_cast %90 : vector<2x1xf32> to vector<2x1xf32>
    %92 = vector.broadcast %91 : vector<2x1xf32> to vector<2x8xf32>
    %93 = arith.select %89, %92, %79 : vector<2x8xi1>, vector<2x8xf32>
    %94 = vector.broadcast %87 : vector<2x1x1xf32> to vector<2x8x8xf32>
    %95 = arith.cmpf oeq, %83, %94 : vector<2x8x8xf32>
    %96 = vector.broadcast %cst_19 : f32 to vector<2x8x8xf32>
    %97 = arith.select %95, %96, %83 : vector<2x8x8xi1>, vector<2x8x8xf32>
    %c5_i32 = arith.constant 5 : i32
    %cst_30 = arith.constant dense<0xFF800000> : vector<2x8xf32>
    %98 = vector.multi_reduction <maximumf>, %97, %cst_30 [2] : vector<2x8x8xf32> to vector<2x8xf32>
    %99 = vector.shape_cast %98 : vector<2x8xf32> to vector<2x8x1xf32>
    %cst_31 = arith.constant dense<0xFF800000> : vector<2x1xf32>
    %100 = vector.multi_reduction <maximumf>, %99, %cst_31 [1] : vector<2x8x1xf32> to vector<2x1xf32>
    %101 = vector.shape_cast %100 : vector<2x1xf32> to vector<2x1x1xf32>
    %102 = vector.broadcast %c5_i32 : i32 to vector<2x8xi32>
    %103 = arith.cmpi eq, %26, %102 : vector<2x8xi32>
    %104 = vector.shape_cast %101 : vector<2x1x1xf32> to vector<2x1xf32>
    %105 = vector.shape_cast %104 : vector<2x1xf32> to vector<2x1xf32>
    %106 = vector.broadcast %105 : vector<2x1xf32> to vector<2x8xf32>
    %107 = arith.select %103, %106, %93 : vector<2x8xi1>, vector<2x8xf32>
    %108 = vector.broadcast %101 : vector<2x1x1xf32> to vector<2x8x8xf32>
    %109 = arith.cmpf oeq, %97, %108 : vector<2x8x8xf32>
    %110 = vector.broadcast %cst_19 : f32 to vector<2x8x8xf32>
    %111 = arith.select %109, %110, %97 : vector<2x8x8xi1>, vector<2x8x8xf32>
    %c6_i32 = arith.constant 6 : i32
    %cst_32 = arith.constant dense<0xFF800000> : vector<2x8xf32>
    %112 = vector.multi_reduction <maximumf>, %111, %cst_32 [2] : vector<2x8x8xf32> to vector<2x8xf32>
    %113 = vector.shape_cast %112 : vector<2x8xf32> to vector<2x8x1xf32>
    %cst_33 = arith.constant dense<0xFF800000> : vector<2x1xf32>
    %114 = vector.multi_reduction <maximumf>, %113, %cst_33 [1] : vector<2x8x1xf32> to vector<2x1xf32>
    %115 = vector.shape_cast %114 : vector<2x1xf32> to vector<2x1x1xf32>
    %116 = vector.broadcast %c6_i32 : i32 to vector<2x8xi32>
    %117 = arith.cmpi eq, %26, %116 : vector<2x8xi32>
    %118 = vector.shape_cast %115 : vector<2x1x1xf32> to vector<2x1xf32>
    %119 = vector.shape_cast %118 : vector<2x1xf32> to vector<2x1xf32>
    %120 = vector.broadcast %119 : vector<2x1xf32> to vector<2x8xf32>
    %121 = arith.select %117, %120, %107 : vector<2x8xi1>, vector<2x8xf32>
    %122 = vector.broadcast %115 : vector<2x1x1xf32> to vector<2x8x8xf32>
    %123 = arith.cmpf oeq, %111, %122 : vector<2x8x8xf32>
    %124 = vector.broadcast %cst_19 : f32 to vector<2x8x8xf32>
    %125 = arith.select %123, %124, %111 : vector<2x8x8xi1>, vector<2x8x8xf32>
    %c7_i32 = arith.constant 7 : i32
    %cst_34 = arith.constant dense<0xFF800000> : vector<2x8xf32>
    %126 = vector.multi_reduction <maximumf>, %125, %cst_34 [2] : vector<2x8x8xf32> to vector<2x8xf32>
    %127 = vector.shape_cast %126 : vector<2x8xf32> to vector<2x8x1xf32>
    %cst_35 = arith.constant dense<0xFF800000> : vector<2x1xf32>
    %128 = vector.multi_reduction <maximumf>, %127, %cst_35 [1] : vector<2x8x1xf32> to vector<2x1xf32>
    %129 = vector.shape_cast %128 : vector<2x1xf32> to vector<2x1x1xf32>
    %130 = vector.broadcast %c7_i32 : i32 to vector<2x8xi32>
    %131 = arith.cmpi eq, %26, %130 : vector<2x8xi32>
    %132 = vector.shape_cast %129 : vector<2x1x1xf32> to vector<2x1xf32>
    %133 = vector.shape_cast %132 : vector<2x1xf32> to vector<2x1xf32>
    %134 = vector.broadcast %133 : vector<2x1xf32> to vector<2x8xf32>
    %135 = arith.select %131, %134, %121 : vector<2x8xi1>, vector<2x8xf32>
    %136 = vector.broadcast %129 : vector<2x1x1xf32> to vector<2x8x8xf32>
    %137 = arith.cmpf oeq, %125, %136 : vector<2x8x8xf32>
    %138 = vector.broadcast %cst_19 : f32 to vector<2x8x8xf32>
    %139 = arith.select %137, %138, %125 : vector<2x8x8xi1>, vector<2x8x8xf32>
    %c8_i32 = arith.constant 8 : i32
    %c8_i32_36 = arith.constant 8 : i32
    %140 = vector.broadcast %c8_i32_36 : i32 to vector<2x8xi32>
    %141 = arith.cmpi slt, %26, %140 : vector<2x8xi32>
    %cst_37 = arith.constant 0xFF800000 : f32
    %142 = vector.broadcast %cst_37 : f32 to vector<2x8xf32>
    %143 = arith.cmpf oeq, %135, %142 : vector<2x8xf32>
    %144 = arith.andi %141, %143 : vector<2x8xi1>
    %c1_i32_38 = arith.constant 1 : i32
    %c0_i32_39 = arith.constant 0 : i32
    %145 = vector.broadcast %c1_i32_38 : i32 to vector<2x8xi32>
    %146 = vector.broadcast %c0_i32_39 : i32 to vector<2x8xi32>
    %147 = arith.select %144, %145, %146 : vector<2x8xi1>, vector<2x8xi32>
    %cst_40 = arith.constant dense<0> : vector<2xi32>
    %148 = vector.multi_reduction <add>, %147, %cst_40 [1] : vector<2x8xi32> to vector<2xi32>
    %149 = vector.shape_cast %148 : vector<2xi32> to vector<2x1xi32>
    %c8_i32_41 = arith.constant 8 : i32
    %150 = vector.broadcast %c8_i32_41 : i32 to vector<2x1xi32>
    %151 = arith.subi %150, %149 : vector<2x1xi32>
    %c1_i32_42 = arith.constant 1 : i32
    %152 = vector.broadcast %c1_i32_42 : i32 to vector<2x1xi32>
    %153 = arith.subi %151, %152 : vector<2x1xi32>
    %c0_i32_43 = arith.constant 0 : i32
    %154 = vector.broadcast %c0_i32_43 : i32 to vector<2x1xi32>
    %155 = arith.maxsi %153, %154 : vector<2x1xi32>
    %156 = vector.broadcast %155 : vector<2x1xi32> to vector<2x8xi32>
    %157 = arith.cmpi eq, %26, %156 : vector<2x8xi32>
    %cst_44 = arith.constant 0.000000e+00 : f32
    %158 = vector.broadcast %cst_44 : f32 to vector<2x8xf32>
    %159 = arith.select %157, %135, %158 : vector<2x8xi1>, vector<2x8xf32>
    %cst_45 = arith.constant dense<0.000000e+00> : vector<2xf32>
    %160 = vector.multi_reduction <add>, %159, %cst_45 [1] : vector<2x8xf32> to vector<2xf32>
    %161 = vector.shape_cast %160 : vector<2xf32> to vector<2x1xf32>
    %cst_46 = arith.constant 0xFF800000 : f32
    %162 = vector.broadcast %cst_46 : f32 to vector<2x8xf32>
    %163 = arith.cmpf oeq, %135, %162 : vector<2x8xf32>
    %164 = arith.andi %141, %163 : vector<2x8xi1>
    %165 = vector.shape_cast %161 : vector<2x1xf32> to vector<2x1xf32>
    %166 = vector.broadcast %165 : vector<2x1xf32> to vector<2x8xf32>
    %167 = arith.select %164, %166, %135 : vector<2x8xi1>, vector<2x8xf32>
    %c0_47 = arith.constant 0 : index
    %c0_48 = arith.constant 0 : index
    %168 = vector.load %arg7[%c0_47, %c0_48] : memref<8x8xf32, #tpu.memory_space<vmem>>, vector<8x8xf32>
    %cst_49 = arith.constant dense<0.000000e+00> : vector<2x8xf32>
    %169 = tpu.matmul %167, %168, %cst_49 {dimension_numbers = #tpu.dot_dimension_numbers<[1], [1], [0], [0], [0, 0, 1, 0], [], []>} : vector<2x8xf32>, vector<8x8xf32>, vector<2x8xf32> -> vector<2x8xf32>
    %c0_50 = arith.constant 0 : index
    %c0_51 = arith.constant 0 : index
    %170 = vector.load %arg8[%c0_50, %c0_51] : memref<1x8xf32, #tpu.memory_space<vmem>>, vector<1x8xf32>
    %171 = vector.broadcast %170 : vector<1x8xf32> to vector<2x8xf32>
    %172 = arith.addf %169, %171 : vector<2x8xf32>
    %cst_52 = arith.constant 0.000000e+00 : f32
    %173 = vector.broadcast %cst_52 : f32 to vector<2x8xf32>
    %174 = arith.maximumf %172, %173 : vector<2x8xf32>
    %c0_53 = arith.constant 0 : index
    %c0_54 = arith.constant 0 : index
    %175 = vector.load %arg9[%c0_53, %c0_54] : memref<2x8xf32, #tpu.memory_space<vmem>>, vector<2x8xf32>
    %cst_55 = arith.constant dense<0.000000e+00> : vector<2x2xf32>
    %176 = tpu.matmul %174, %175, %cst_55 {dimension_numbers = #tpu.dot_dimension_numbers<[1], [1], [0], [0], [0, 0, 1, 0], [], []>} : vector<2x8xf32>, vector<2x8xf32>, vector<2x2xf32> -> vector<2x2xf32>
    %c0_56 = arith.constant 0 : index
    %c0_57 = arith.constant 0 : index
    %177 = vector.load %arg10[%c0_56, %c0_57] : memref<1x2xf32, #tpu.memory_space<vmem>>, vector<1x2xf32>
    %178 = vector.broadcast %177 : vector<1x2xf32> to vector<2x2xf32>
    %179 = arith.addf %176, %178 : vector<2x2xf32>
    %cst_58 = arith.constant dense<0xFF800000> : vector<2xf32>
    %180 = vector.multi_reduction <maximumf>, %179, %cst_58 [1] : vector<2x2xf32> to vector<2xf32>
    %181 = vector.shape_cast %180 : vector<2xf32> to vector<2x1xf32>
    %182 = vector.broadcast %181 : vector<2x1xf32> to vector<2x2xf32>
    %183 = arith.subf %179, %182 : vector<2x2xf32>
    %184 = math.exp %183 : vector<2x2xf32>
    %cst_59 = arith.constant dense<0.000000e+00> : vector<2xf32>
    %185 = vector.multi_reduction <add>, %184, %cst_59 [1] : vector<2x2xf32> to vector<2xf32>
    %186 = vector.shape_cast %185 : vector<2xf32> to vector<2x1xf32>
    %187 = vector.broadcast %186 : vector<2x1xf32> to vector<2x2xf32>
    %188 = arith.divf %184, %187 : vector<2x2xf32>
    %c0_60 = arith.constant 0 : index
    %c0_61 = arith.constant 0 : index
    %189 = vector.load %arg11[%c0_60, %c0_61] : memref<2x2xf32, #tpu.memory_space<vmem>>, vector<2x2xf32>
    tpu.vector_store %arg11[%c0_60, %c0_61], %188 {strides = array<i32>} : memref<2x2xf32, #tpu.memory_space<vmem>>, vector<2x2xf32>,
    return
  }
  func.func @transform_0(%arg0: i32) -> (i32, i32, i32) {
    %c0_i32 = arith.constant 0 : i32
    %c0_i32_0 = arith.constant 0 : i32
    %c0_i32_1 = arith.constant 0 : i32
    return %arg0, %c0_i32, %c0_i32_0 : i32, i32, i32
  }
  func.func @transform_1(%arg0: i32) -> (i32, i32, i32) {
    %c0_i32 = arith.constant 0 : i32
    %c0_i32_0 = arith.constant 0 : i32
    %c0_i32_1 = arith.constant 0 : i32
    return %arg0, %c0_i32, %c0_i32_0 : i32, i32, i32
  }
  func.func @transform_2(%arg0: i32) -> (i32, i32) {
    %c0_i32 = arith.constant 0 : i32
    %c0_i32_0 = arith.constant 0 : i32
    %c0_i32_1 = arith.constant 0 : i32
    return %c0_i32, %c0_i32_0 : i32, i32
  }
  func.func @transform_3(%arg0: i32) -> (i32, i32) {
    %c0_i32 = arith.constant 0 : i32
    %c0_i32_0 = arith.constant 0 : i32
    return %arg0, %c0_i32 : i32, i32
  }
  func.func @transform_4(%arg0: i32) -> (i32, i32) {
    %c0_i32 = arith.constant 0 : i32
    %c0_i32_0 = arith.constant 0 : i32
    return %arg0, %c0_i32 : i32, i32
  }
  func.func @transform_5(%arg0: i32) -> (i32, i32) {
    %c0_i32 = arith.constant 0 : i32
    %c0_i32_0 = arith.constant 0 : i32
    %c0_i32_1 = arith.constant 0 : i32
    return %c0_i32, %c0_i32_0 : i32, i32
  }
  func.func @transform_6(%arg0: i32) -> (i32, i32) {
    %c0_i32 = arith.constant 0 : i32
    %c0_i32_0 = arith.constant 0 : i32
    %c0_i32_1 = arith.constant 0 : i32
    return %c0_i32, %c0_i32_0 : i32, i32
  }
  func.func @transform_7(%arg0: i32) -> (i32, i32) {
    %c0_i32 = arith.constant 0 : i32
    %c0_i32_0 = arith.constant 0 : i32
    %c0_i32_1 = arith.constant 0 : i32
    return %c0_i32, %c0_i32_0 : i32, i32
  }
  func.func @transform_8(%arg0: i32) -> (i32, i32) {
    %c0_i32 = arith.constant 0 : i32
    %c0_i32_0 = arith.constant 0 : i32
    %c0_i32_1 = arith.constant 0 : i32
    return %c0_i32, %c0_i32_0 : i32, i32
  }
  func.func @transform_9(%arg0: i32) -> (i32, i32) {
    %c0_i32 = arith.constant 0 : i32
    %c0_i32_0 = arith.constant 0 : i32
    %c0_i32_1 = arith.constant 0 : i32
    return %c0_i32, %c0_i32_0 : i32, i32
  }
  func.func @transform_10(%arg0: i32) -> (i32, i32) {
    %c0_i32 = arith.constant 0 : i32
    %c0_i32_0 = arith.constant 0 : i32
    return %arg0, %c0_i32 : i32, i32
  }
}

</mosaic_0001>

<bundles_post_ra>
// kernel: tpu_custom_call.1
= control target key start
LH: loop header
LB: loop body
LE: loop exit
PB: predicated region body
PF: predicated region fallthrough
CT: control target
= control target key end

     0   :  { %16 = vsyncpa [#allocation4], 0  ;;  %s908_s0 = inlined_call_operand.hbm [shape: bf16[2,8,32], index: 0, kind: input, shape index: {}]   ;;  %s909_s1 = inlined_call_operand.hbm [shape: bf16[2,8,32], index: 1, kind: input, shape index: {}]   ;;  %s910_s2 = inlined_call_operand.hbm [shape: bf16[32,32], index: 2, kind: input, shape index: {}]   ;;  %s911_s3 = inlined_call_operand.vmem [shape: f32[2,8], index: 3, kind: input, shape index: {}]   ;;  %s912_s4 = inlined_call_operand.vmem [shape: f32[2,8], index: 4, kind: input, shape index: {}]   ;;  %s913_s5 = inlined_call_operand.<no memory space> [shape: f32[1,1], index: 5, kind: input, shape index: {}]   ;;  %s914_s6 = inlined_call_operand.hbm [shape: f32[8,8], index: 6, kind: input, shape index: {}]   ;;  %s915_s7 = inlined_call_operand.vmem [shape: f32[1,8], index: 7, kind: input, shape index: {}]   ;;  %s916_s8 = inlined_call_operand.vmem [shape: f32[2,8], index: 8, kind: input, shape index: {}]   ;;  %s917_s9 = inlined_call_operand.vmem [shape: f32[1,2], index: 9, kind: input, shape index: {}]   ;;  %s918_s10 = inlined_call_operand.hbm [shape: f32[2,2], index: 10, kind: output, shape index: {}]  }
   0x1   :  { %17 = vsyncpa [#allocation7], 0 }
   0x2   :  { %18 = vsyncpa [#allocation10], 0 }
   0x3   :  { %19 = vsyncpa [#allocation5], 0  ;;  %s37_s15 = sshll.u32 %s909_s1, 4  ;;  %s749_s16 = smov [#allocation6]   ;;  %s38_s15 = int_to_ptr.hbm [resolvable:$true] %s37_s15 }
   0x4   :  { %s39_s17 = sshll.u32 %s749_s16, 4  ;;  %s24_s20 = sshll.u32 %s908_s0, 4  ;;  %s40_s17 = int_to_ptr.vmem [resolvable:$true] %s39_s17  ;;  %s25_s20 = int_to_ptr.hbm [resolvable:$true] %s24_s20 }
   0x5   :  { %s750_s21 = smov 64   ;;  %s751_s22 = smov 4  }
   0x6   :  { %45 = dma.hbm_to_vmem [thread:$0]  %s38_s15, 128, %s40_s17, [#allocation7], %s750_s21, %s750_s21, %s751_s22  }
   0x7   :  { %s752_s23 = smov [#allocation3]   ;;  %s50_s27 = sshll.u32 %s910_s2, 4  ;;  %s51_s27 = int_to_ptr.hbm [resolvable:$true] %s50_s27 }
   0x8   :  { %s26_s24 = sshll.u32 %s752_s23, 4  ;;  %s70_s29 = sshll.u32 %s914_s6, 4  ;;  %s27_s24 = int_to_ptr.vmem [resolvable:$true] %s26_s24  ;;  %s71_s29 = int_to_ptr.hbm [resolvable:$true] %s70_s29 }
   0x9   :  { %32 = dma.hbm_to_vmem [thread:$0]  %s25_s20, 128, %s27_s24, [#allocation4], %s750_s21, %s750_s21, %s751_s22  }
   0xa   :  { %s753_s30 = smov [#allocation8]   ;;  %s754_s0 = smov [#allocation9]  }
   0xb   :  { %s52_s11 = sshll.u32 %s753_s30, 4  ;;  %s72_s12 = sshll.u32 %s754_s0, 4  ;;  %s53_s11 = int_to_ptr.vmem [resolvable:$true] %s52_s11  ;;  %s73_s12 = int_to_ptr.vmem [resolvable:$true] %s72_s12 }
   0xc   :  { %58 = dma.hbm_to_vmem [thread:$0]  %s51_s27, 256, %s53_s11, [#allocation7], %s750_s21, %s750_s21, %s751_s22  }
   0xd   :  { %75 = dma.hbm_to_vmem [thread:$0]  %s71_s29, 128, %s73_s12, [#allocation10]  }
   0xe   :  { %741 = dma.done.wait [#allocation4], 128  }
   0xf   :  { %742 = vsyncadd [#allocation4], 4294967168 }
  0x10   :  { %743 = dma.done.wait [#allocation7], 384  }
  0x11   :  { %744 = vsyncadd [#allocation7], 4294966912 }
  0x12   :  { %745 = dma.done.wait [#allocation10], 128  }
  0x13   :  { %746 = vsyncadd [#allocation10], 4294967168  ;;  %v605_v0 = vld [vmem:[#allocation8 + $0x8] sm:$0xff]  ;;  %vm122_vm0 = vcmask 261120   ;;  %v142_v1 = vld [vmem:[#allocation6] sm:$0xf]  ;;  %v188_v6 = vlaneseq  ;;  %v145_v21 = vstv %s913_s5 }
  0x14   :  { %132 = vmatpush.bf16.msra.mxu0 %v605_v0  ;;  %v604_v2 = vld [vmem:[#allocation8] sm:$0xff]  ;;  %v150_v3 = vsel %vm122_vm0, %v142_v1, 0  ;;  %v603_v4 = vld [vmem:[#allocation3] sm:$0xff]  ;;  %v143_v5 = vld [vmem:[#allocation6 + $0x4] sm:$0xf]  ;;  %v755_v17 = vmov 0  }
  0x15   :  { %159 = vmatpush.bf16.xpose.msra.mxu1 %v150_v3  ;;  %v169_v7 = vsel %vm122_vm0, %v143_v5, 0  ;;  %v189_v8 = vshrl.u32 %v188_v6, 7  ;;  %v186_v9 = vld [vmem:[%s911_s3] sm:$0x3]  ;;  %vm225_vm5 = vcmask 64512   ;;  %vm247_vm11 = vcmask 1041409  }
  0x16   :  { %178 = vmatpush.bf16.xpose.msra.mxu2 %v169_v7  ;;  %v187_v10 = vperm.slane %v186_v9, 0  ;;  %v194_v11 = vperm.slane %v186_v9, 1  ;;  %v203_v16 = vld [vmem:[%s912_s4] sm:$0x3]  ;;  %v848_v7 = vand.u32 127, %v188_v6  ;;  %s571_s21 = sshll.u32 %s918_s10, 4  ;;  %s572_s21 = int_to_ptr.hbm [resolvable:$true] %s571_s21 }
  0x17   :  { %614 = vset.pattern.permute.xlu0 %v189_v8  ;;  %vm207_vm1 = vcmp.eq.f32.partialorder %v203_v16, 0.0  ;;  %v205_v24 = vrot.slane %v203_v16, 1 }
  0x18   :  { %133 = vmatpush.bf16.msra.mxu0 %v604_v2  ;;  %v213_v18 = vsel %vm207_vm1, 1, %v755_v17  ;;  %vm244_vm14 = vcmp.eq.s32.totalorder %v848_v7, 0  ;;  %vm273_vm15 = vcmp.eq.s32.totalorder %v848_v7, 1 }
  0x19   :  { %v215_v19 = vperm.slane %v213_v18, 0  ;;  %vm208_vm6 = vcmp.eq.f32.partialorder %v205_v24, 0.0 }
  0x1a   :  { %v214_v28 = vsel %vm208_vm6, 1, %v755_v17  ;;  %vm329_vm6 = vcmp.eq.s32.totalorder %v848_v7, 3 }
  0x1b   :  { %595 = vmatmul.msk.bf16.vlgmr.msra.gmra.mxu0 %vm122_vm0, %v603_v4  ;;  %vm217_vm2 = vcmp.eq.s32.totalorder %v215_v19, 1  ;;  %v216_v30 = vperm.slane %v214_v28, 0 }
  0x1d   :  { %vm218_vm7 = vcmp.eq.s32.totalorder %v216_v30, 1 }
  0x1f   :  { %192 = vperm.xlu0 %614, %v187_v10  }
  0x27   :  { %199 = vperm.xlu0 %614, %v194_v11  }
  0x91   :  { %v193_v20 = vpop.permute.xlu0 %192 }
  0x92   :  { %vm201_vm3 = vcmp.eq.f32.partialorder %v193_v20, 0.0 }
  0x93   :  { %vm219_vm4 = vmand %vm201_vm3, %vm217_vm2  ;;  %vm301_vm2 = vcmp.eq.s32.totalorder %v848_v7, 2 }
  0x98   :  { %v135_v12 = vpop.f32.mrf.mxu0 }
  0x99   :  { %v140_v13 = vpack.c.bf16 %v135_v12, %v135_v12  ;;  %v200_v31 = vpop.permute.xlu0 %199 }
  0x9a   :  { %vm202_vm8 = vcmp.eq.f32.partialorder %v200_v31, 0.0 }
  0x9b   :  { %596 = vmatmul.msk.bf16.vlgmr.msra.gmra.mxu1 %vm122_vm0, %v140_v13  ;;  %vm220_vm9 = vmand %vm202_vm8, %vm218_vm7 }
  0xa0   :  { %v137_v14 = vpop.f32.mrf.mxu0 }
  0xa1   :  { %v141_v15 = vpack.c.bf16 %v137_v14, %v137_v14 }
  0xa3   :  { %597 = vmatmul.msk.bf16.vlgmr.msra.gmra.mxu2 %vm122_vm0, %v141_v15 }
 0x118   :  { %v161_v22 = vpop.f32.mrf.mxu1 }
 0x119   :  { %v162_v23 = vadd.f32 %v161_v22, %v145_v21 }
 0x11b   :  { %v184_v25 = vmax.f32 %v162_v23, 0.0 }
 0x11d   :  { %v221_v26 = vsel %vm219_vm4, %v184_v25, -inf }
 0x11e   :  { %v226_v27 = vsel %vm225_vm5, %v221_v26, -inf }
 0x11f   :  { %227 = vmax.xlane.f32.xlu1 %v226_v27 }
 0x120   :  { %v163_v29 = vpop.f32.mrf.mxu1 }
 0x126   :  { %v180_v32 = vpop.f32.mrf.mxu2 }
 0x127   :  { %v181_v33 = vadd.f32 %v180_v32, %v145_v21 }
 0x129   :  { %v185_v34 = vmax.f32 %v181_v33, 0.0 }
 0x12b   :  { %v222_v35 = vsel %vm220_vm9, %v185_v34, -inf  ;;  %vm357_vm9 = vcmp.eq.s32.totalorder %v848_v7, 4 }
 0x12c   :  { %v229_v36 = vsel %vm225_vm5, %v222_v35, -inf }
 0x12d   :  { %230 = vmax.xlane.f32.xlu1 %v229_v36 }
 0x12e   :  { %v182_v37 = vpop.f32.mrf.mxu2 }
 0x192   :  { %v228_v38 = vpop.xlane.xlu1 %227 }
 0x193   :  { %v232_v39 = vrot.slane %v228_v38, 4 }
 0x195   :  { %v233_v40 = vmax.f32 %v228_v38, %v232_v39 }
 0x197   :  { %v234_v41 = vrot.slane %v233_v40, 2 }
 0x199   :  { %v235_v42 = vmax.f32 %v233_v40, %v234_v41 }
 0x19b   :  { %v236_v43 = vrot.slane %v235_v42, 1 }
 0x19d   :  { %v237_v44 = vmax.f32 %v235_v42, %v236_v43 }
 0x19f   :  { %vm251_vm10 = vcmp.eq.f32.partialorder %v221_v26, %v237_v44 }
 0x1a0   :  { %v231_v45 = vpop.xlane.xlu1 %230  ;;  %v253_v46 = vsel %vm251_vm10, -inf, %v221_v26 }
 0x1a1   :  { %v238_v47 = vrot.slane %v231_v45, 4  ;;  %v255_v48 = vsel %vm225_vm5, %v253_v46, -inf }
 0x1a2   :  { %256 = vmax.xlane.f32.xlu2 %v255_v48 }
 0x1a3   :  { %v239_v49 = vmax.f32 %v231_v45, %v238_v47 }
 0x1a5   :  { %v240_v50 = vrot.slane %v239_v49, 2 }
 0x1a7   :  { %v241_v51 = vmax.f32 %v239_v49, %v240_v50 }
 0x1a9   :  { %v242_v52 = vrot.slane %v241_v51, 1 }
 0x1ab   :  { %v243_v53 = vmax.f32 %v241_v51, %v242_v52 }
 0x1ad   :  { %vm252_vm12 = vcmp.eq.f32.partialorder %v222_v35, %v243_v53  ;;  %v248_v54 = vsel %vm247_vm11, %v243_v53, %v237_v44 }
 0x1ae   :  { %v254_v55 = vsel %vm252_vm12, -inf, %v222_v35  ;;  %v250_v11 = vsel %vm244_vm14, %v248_v54, -inf }
 0x1af   :  { %v258_v56 = vsel %vm225_vm5, %v254_v55, -inf }
 0x1b0   :  { %259 = vmax.xlane.f32.xlu2 %v258_v56 }
 0x215   :  { %v257_v57 = vpop.xlane.xlu2 %256 }
 0x216   :  { %v261_v58 = vrot.slane %v257_v57, 4 }
 0x218   :  { %v262_v59 = vmax.f32 %v257_v57, %v261_v58 }
 0x21a   :  { %v263_v60 = vrot.slane %v262_v59, 2 }
 0x21c   :  { %v264_v61 = vmax.f32 %v262_v59, %v263_v60 }
 0x21e   :  { %v265_v62 = vrot.slane %v264_v61, 1 }
 0x220   :  { %v266_v63 = vmax.f32 %v264_v61, %v265_v62 }
 0x222   :  { %vm279_vm13 = vcmp.eq.f32.partialorder %v253_v46, %v266_v63 }
 0x223   :  { %v260_v0 = vpop.xlane.xlu2 %259  ;;  %v281_v1 = vsel %vm279_vm13, -inf, %v253_v46  ;;  %vm385_vm13 = vcmp.eq.s32.totalorder %v848_v7, 5 }
 0x224   :  { %v267_v2 = vrot.slane %v260_v0, 4  ;;  %v283_v3 = vsel %vm225_vm5, %v281_v1, -inf }
 0x225   :  { %284 = vmax.xlane.f32.xlu0 %v283_v3 }
 0x226   :  { %v268_v4 = vmax.f32 %v260_v0, %v267_v2 }
 0x228   :  { %v269_v5 = vrot.slane %v268_v4, 2 }
 0x22a   :  { %v270_v8 = vmax.f32 %v268_v4, %v269_v5 }
 0x22c   :  { %v271_v9 = vrot.slane %v270_v8, 1 }
 0x22e   :  { %v272_v10 = vmax.f32 %v270_v8, %v271_v9 }
 0x230   :  { %vm280_vm0 = vcmp.eq.f32.partialorder %v254_v55, %v272_v10  ;;  %v276_v12 = vsel %vm247_vm11, %v272_v10, %v266_v63 }
 0x231   :  { %v282_v13 = vsel %vm280_vm0, -inf, %v254_v55  ;;  %v278_v14 = vsel %vm273_vm15, %v276_v12, %v250_v11  ;;  %vm413_vm0 = vcmp.eq.s32.totalorder %v848_v7, 6 }
 0x232   :  { %v286_v15 = vsel %vm225_vm5, %v282_v13, -inf }
 0x233   :  { %287 = vmax.xlane.f32.xlu1 %v286_v15 }
 0x298   :  { %v285_v16 = vpop.xlane.xlu0 %284 }
 0x299   :  { %v289_v18 = vrot.slane %v285_v16, 4 }
 0x29b   :  { %v290_v6 = vmax.f32 %v285_v16, %v289_v18 }
 0x29d   :  { %v291_v19 = vrot.slane %v290_v6, 2 }
 0x29f   :  { %v292_v20 = vmax.f32 %v290_v6, %v291_v19 }
 0x2a1   :  { %v293_v21 = vrot.slane %v292_v20, 1 }
 0x2a3   :  { %v294_v22 = vmax.f32 %v292_v20, %v293_v21 }
 0x2a5   :  { %vm307_vm1 = vcmp.eq.f32.partialorder %v281_v1, %v294_v22 }
 0x2a6   :  { %v288_v23 = vpop.xlane.xlu1 %287  ;;  %v309_v24 = vsel %vm307_vm1, -inf, %v281_v1 }
 0x2a7   :  { %v295_v25 = vrot.slane %v288_v23, 4  ;;  %v311_v26 = vsel %vm225_vm5, %v309_v24, -inf }
 0x2a8   :  { %312 = vmax.xlane.f32.xlu2 %v311_v26 }
 0x2a9   :  { %v296_v27 = vmax.f32 %v288_v23, %v295_v25 }
 0x2ab   :  { %v297_v28 = vrot.slane %v296_v27, 2 }
 0x2ad   :  { %v298_v29 = vmax.f32 %v296_v27, %v297_v28 }
 0x2af   :  { %v299_v30 = vrot.slane %v298_v29, 1 }
 0x2b1   :  { %v300_v31 = vmax.f32 %v298_v29, %v299_v30 }
 0x2b3   :  { %vm308_vm3 = vcmp.eq.f32.partialorder %v282_v13, %v300_v31  ;;  %v304_v32 = vsel %vm247_vm11, %v300_v31, %v294_v22 }
 0x2b4   :  { %v310_v33 = vsel %vm308_vm3, -inf, %v282_v13  ;;  %v306_v34 = vsel %vm301_vm2, %v304_v32, %v278_v14  ;;  %vm441_vm2 = vcmp.eq.s32.totalorder %v848_v7, 7  ;;  %vm447_vm3 = vcmp.lt.s32.totalorder %v848_v7, 8 }
 0x2b5   :  { %v314_v35 = vsel %vm225_vm5, %v310_v33, -inf }
 0x2b6   :  { %315 = vmax.xlane.f32.xlu1 %v314_v35 }
 0x31b   :  { %v313_v36 = vpop.xlane.xlu2 %312 }
 0x31c   :  { %v317_v37 = vrot.slane %v313_v36, 4 }
 0x31e   :  { %v318_v38 = vmax.f32 %v313_v36, %v317_v37 }
 0x320   :  { %v319_v39 = vrot.slane %v318_v38, 2 }
 0x322   :  { %v320_v40 = vmax.f32 %v318_v38, %v319_v39 }
 0x324   :  { %v321_v41 = vrot.slane %v320_v40, 1 }
 0x326   :  { %v322_v42 = vmax.f32 %v320_v40, %v321_v41 }
 0x328   :  { %vm335_vm4 = vcmp.eq.f32.partialorder %v309_v24, %v322_v42 }
 0x329   :  { %v316_v43 = vpop.xlane.xlu1 %315  ;;  %v337_v44 = vsel %vm335_vm4, -inf, %v309_v24 }
 0x32a   :  { %v323_v45 = vrot.slane %v316_v43, 4  ;;  %v339_v46 = vsel %vm225_vm5, %v337_v44, -inf }
 0x32b   :  { %340 = vmax.xlane.f32.xlu2 %v339_v46 }
 0x32c   :  { %v324_v47 = vmax.f32 %v316_v43, %v323_v45 }
 0x32e   :  { %v325_v48 = vrot.slane %v324_v47, 2 }
 0x330   :  { %v326_v49 = vmax.f32 %v324_v47, %v325_v48 }
 0x332   :  { %v327_v50 = vrot.slane %v326_v49, 1 }
 0x334   :  { %v328_v51 = vmax.f32 %v326_v49, %v327_v50 }
 0x336   :  { %vm336_vm7 = vcmp.eq.f32.partialorder %v310_v33, %v328_v51  ;;  %v332_v52 = vsel %vm247_vm11, %v328_v51, %v322_v42 }
 0x337   :  { %v338_v53 = vsel %vm336_vm7, -inf, %v310_v33  ;;  %v334_v54 = vsel %vm329_vm6, %v332_v52, %v306_v34  ;;  %vm451_vm6 = vcmask 58368  }
 0x338   :  { %v342_v55 = vsel %vm225_vm5, %v338_v53, -inf }
 0x339   :  { %343 = vmax.xlane.f32.xlu1 %v342_v55 }
 0x39e   :  { %v341_v56 = vpop.xlane.xlu2 %340 }
 0x39f   :  { %v345_v57 = vrot.slane %v341_v56, 4 }
 0x3a1   :  { %v346_v58 = vmax.f32 %v341_v56, %v345_v57 }
 0x3a3   :  { %v347_v59 = vrot.slane %v346_v58, 2 }
 0x3a5   :  { %v348_v60 = vmax.f32 %v346_v58, %v347_v59 }
 0x3a7   :  { %v349_v61 = vrot.slane %v348_v60, 1 }
 0x3a9   :  { %v350_v62 = vmax.f32 %v348_v60, %v349_v61 }
 0x3ab   :  { %vm363_vm8 = vcmp.eq.f32.partialorder %v337_v44, %v350_v62 }
 0x3ac   :  { %v344_v63 = vpop.xlane.xlu1 %343  ;;  %v365_v0 = vsel %vm363_vm8, -inf, %v337_v44 }
 0x3ad   :  { %v351_v1 = vrot.slane %v344_v63, 4  ;;  %v367_v2 = vsel %vm225_vm5, %v365_v0, -inf }
 0x3ae   :  { %368 = vmax.xlane.f32.xlu2 %v367_v2 }
 0x3af   :  { %v352_v3 = vmax.f32 %v344_v63, %v351_v1 }
 0x3b1   :  { %v353_v4 = vrot.slane %v352_v3, 2 }
 0x3b3   :  { %v354_v5 = vmax.f32 %v352_v3, %v353_v4 }
 0x3b5   :  { %v355_v8 = vrot.slane %v354_v5, 1 }
 0x3b7   :  { %v356_v9 = vmax.f32 %v354_v5, %v355_v8 }
 0x3b9   :  { %vm364_vm10 = vcmp.eq.f32.partialorder %v338_v53, %v356_v9  ;;  %v360_v10 = vsel %vm247_vm11, %v356_v9, %v350_v62 }
 0x3ba   :  { %v366_v11 = vsel %vm364_vm10, -inf, %v338_v53  ;;  %v362_v12 = vsel %vm357_vm9, %v360_v10, %v334_v54  ;;  %vm538_vm9 = vcmask 9216  }
 0x3bb   :  { %v370_v13 = vsel %vm225_vm5, %v366_v11, -inf }
 0x3bc   :  { %371 = vmax.xlane.f32.xlu1 %v370_v13 }
 0x421   :  { %v369_v14 = vpop.xlane.xlu2 %368 }
 0x422   :  { %v373_v15 = vrot.slane %v369_v14, 4 }
 0x424   :  { %v374_v16 = vmax.f32 %v369_v14, %v373_v15  ;;  %v475_v15 = vld [vmem:[#allocation9] sm:$0xff] }
 0x425   :  { %599 = vmatpush.xpose.msk.msra.mxu3 %vm225_vm5, %v475_v15 }
 0x426   :  { %v375_v18 = vrot.slane %v374_v16, 2 }
 0x428   :  { %v376_v6 = vmax.f32 %v374_v16, %v375_v18 }
 0x42a   :  { %v377_v19 = vrot.slane %v376_v6, 1 }
 0x42c   :  { %v378_v20 = vmax.f32 %v376_v6, %v377_v19 }
 0x42e   :  { %vm391_vm12 = vcmp.eq.f32.partialorder %v365_v0, %v378_v20 }
 0x42f   :  { %v372_v21 = vpop.xlane.xlu1 %371  ;;  %v393_v22 = vsel %vm391_vm12, -inf, %v365_v0 }
 0x430   :  { %v379_v23 = vrot.slane %v372_v21, 4  ;;  %v395_v24 = vsel %vm225_vm5, %v393_v22, -inf }
 0x431   :  { %396 = vmax.xlane.f32.xlu2 %v395_v24 }
 0x432   :  { %v380_v25 = vmax.f32 %v372_v21, %v379_v23 }
 0x434   :  { %v381_v26 = vrot.slane %v380_v25, 2 }
 0x436   :  { %v382_v27 = vmax.f32 %v380_v25, %v381_v26  ;;  %v507_v26 = vld [vmem:[%s916_s8] sm:$0x3] }
 0x437   :  { %601 = vmatpush.xpose.msk.msrb.mxu3 %vm225_vm5, %v507_v26 }
 0x438   :  { %v383_v28 = vrot.slane %v382_v27, 1 }
 0x43a   :  { %v384_v29 = vmax.f32 %v382_v27, %v383_v28 }
 0x43c   :  { %vm392_vm14 = vcmp.eq.f32.partialorder %v366_v11, %v384_v29  ;;  %v388_v30 = vsel %vm247_vm11, %v384_v29, %v378_v20 }
 0x43d   :  { %v394_v31 = vsel %vm392_vm14, -inf, %v366_v11  ;;  %v390_v32 = vsel %vm385_vm13, %v388_v30, %v362_v12 }
 0x43e   :  { %v398_v33 = vsel %vm225_vm5, %v394_v31, -inf }
 0x43f   :  { %399 = vmax.xlane.f32.xlu1 %v398_v33 }
 0x4a4   :  { %v397_v34 = vpop.xlane.xlu2 %396 }
 0x4a5   :  { %v401_v35 = vrot.slane %v397_v34, 4 }
 0x4a7   :  { %v402_v36 = vmax.f32 %v397_v34, %v401_v35 }
 0x4a9   :  { %v403_v37 = vrot.slane %v402_v36, 2 }
 0x4ab   :  { %v404_v38 = vmax.f32 %v402_v36, %v403_v37 }
 0x4ad   :  { %v405_v39 = vrot.slane %v404_v38, 1 }
 0x4af   :  { %v406_v40 = vmax.f32 %v404_v38, %v405_v39 }
 0x4b1   :  { %vm419_vm15 = vcmp.eq.f32.partialorder %v393_v22, %v406_v40 }
 0x4b2   :  { %v400_v41 = vpop.xlane.xlu1 %399  ;;  %v421_v42 = vsel %vm419_vm15, -inf, %v393_v22 }
 0x4b3   :  { %v407_v43 = vrot.slane %v400_v41, 4  ;;  %v423_v44 = vsel %vm225_vm5, %v421_v42, -inf }
 0x4b4   :  { %424 = vmax.xlane.f32.xlu2 %v423_v44 }
 0x4b5   :  { %v408_v45 = vmax.f32 %v400_v41, %v407_v43 }
 0x4b7   :  { %v409_v46 = vrot.slane %v408_v45, 2 }
 0x4b9   :  { %v410_v47 = vmax.f32 %v408_v45, %v409_v46 }
 0x4bb   :  { %v411_v48 = vrot.slane %v410_v47, 1 }
 0x4bd   :  { %v412_v49 = vmax.f32 %v410_v47, %v411_v48 }
 0x4bf   :  { %vm420_vm1 = vcmp.eq.f32.partialorder %v394_v31, %v412_v49  ;;  %v416_v50 = vsel %vm247_vm11, %v412_v49, %v406_v40 }
 0x4c0   :  { %v422_v51 = vsel %vm420_vm1, -inf, %v394_v31  ;;  %v418_v52 = vsel %vm413_vm0, %v416_v50, %v390_v32  ;;  %v616_v32 = vld [vmem:[%s917_s9] ss:$0 sm:$0xff] }
 0x4c1   :  { %v426_v53 = vsel %vm225_vm5, %v422_v51, -inf }
 0x4c2   :  { %427 = vmax.xlane.f32.xlu1 %v426_v53 }
 0x527   :  { %v425_v54 = vpop.xlane.xlu2 %424 }
 0x528   :  { %v429_v55 = vrot.slane %v425_v54, 4 }
 0x52a   :  { %v430_v56 = vmax.f32 %v425_v54, %v429_v55 }
 0x52c   :  { %v431_v57 = vrot.slane %v430_v56, 2 }
 0x52e   :  { %v432_v60 = vmax.f32 %v430_v56, %v431_v57 }
 0x530   :  { %v433_v63 = vrot.slane %v432_v60, 1 }
 0x532   :  { %v434_v2 = vmax.f32 %v432_v60, %v433_v63 }
 0x535   :  { %v428_v58 = vpop.xlane.xlu1 %427 }
 0x536   :  { %v435_v59 = vrot.slane %v428_v58, 4 }
 0x538   :  { %v436_v61 = vmax.f32 %v428_v58, %v435_v59 }
 0x53a   :  { %v437_v62 = vrot.slane %v436_v61, 2 }
 0x53c   :  { %v438_v0 = vmax.f32 %v436_v61, %v437_v62 }
 0x53e   :  { %v439_v1 = vrot.slane %v438_v0, 1 }
 0x540   :  { %v440_v3 = vmax.f32 %v438_v0, %v439_v1 }
 0x542   :  { %v444_v4 = vsel %vm247_vm11, %v440_v3, %v434_v2 }
 0x543   :  { %v446_v5 = vsel %vm441_vm2, %v444_v4, %v418_v52 }
 0x544   :  { %vm448_vm4 = vcmp.eq.f32.partialorder %v446_v5, -inf }
 0x545   :  { %vm877_vm7 = vmand %vm447_vm3, %vm448_vm4 }
 0x546   :  { %v450_v9 = vsel %vm877_vm7, 1, %v755_v17 }
 0x547   :  { %v452_v10 = vsel %vm451_vm6, %v450_v9, 0 }
 0x548   :  { %v454_v11 = vshrl.u32 %v452_v10, 16  ;;  %v453_v12 = vand.u32 65535, %v452_v10 }
 0x54a   :  { %v456_v13 = vcvt.s32.f32 %v454_v11  ;;  %v455_v14 = vcvt.s32.f32 %v453_v12 }
 0x54c   :  { %459 = vadd.xlane.f32.xlu2 %v456_v13  ;;  %457 = vadd.xlane.f32.xlu0 %v455_v14 }
 0x5bf   :  { %v460_v16 = vpop.xlane.xlu2 %459  ;;  %v458_v18 = vpop.xlane.xlu0 %457 }
 0x5c0   :  { %v462_v6 = vcvt.f32.s32 %v460_v16  ;;  %v461_v20 = vcvt.f32.s32 %v458_v18 }
 0x5c2   :  { %v463_v19 = vshll.u32 %v462_v6, 16 }
 0x5c4   :  { %v464_v21 = vadd.s32 %v463_v19, %v461_v20 }
 0x5c6   :  { %v465_v22 = vsub.s32 8, %v464_v21 }
 0x5c8   :  { %v598_v23 = vadd.s32 4294967295, %v465_v22 }
 0x5ca   :  { %vm467_vm11 = vcmp.gt.s32.totalorder %v598_v23, 0 }
 0x5cb   :  { %v468_v17 = vsel %vm467_vm11, %v598_v23, 0 }
 0x5cc   :  { %vm469_vm8 = vcmp.eq.s32.totalorder %v848_v7, %v468_v17  ;;  %v615_v7 = vld [vmem:[%s915_s7] ss:$0 sm:$0xff]  ;;  %s756_s7 = smov [#allocation11]  }
 0x5cd   :  { %v470_v24 = vsel %vm469_vm8, %v446_v5, 0.0  ;;  %s569_s8 = sshll.u32 %s756_s7, 4  ;;  %s570_s8 = int_to_ptr.vmem [resolvable:$true] %s569_s8 }
 0x5ce   :  { %v471_v25 = vsel %vm451_vm6, %v470_v24, 0.0 }
 0x5cf   :  { %472 = vadd.xlane.f32.xlu1 %v471_v25 }
 0x642   :  { %v473_v27 = vpop.xlane.xlu1 %472 }
 0x643   :  { %v474_v28 = vsel %vm877_vm7, %v473_v27, %v446_v5 }
 0x644   :  { %600 = vmatmul.msk.f32.vlgmr.msra.gmra.mxu3 %vm225_vm5, %v474_v28 }
 0x6c7   :  { %v503_v29 = vpop.f32.mrf.mxu3 }
 0x6c8   :  { %v504_v30 = vadd.f32 %v615_v7, %v503_v29 }
 0x6ca   :  { %v506_v31 = vmax.f32 %v504_v30, 0.0 }
 0x6cc   :  { %602 = vmatmul.msk.f32.vlgmr.msrb.gmra.mxu3 %vm225_vm5, %v506_v31 }
 0x74f   :  { %v535_v33 = vpop.f32.mrf.mxu3 }
 0x750   :  { %v536_v34 = vadd.f32 %v616_v32, %v535_v33 }
 0x752   :  { %v539_v35 = vsel %vm538_vm9, %v536_v34, -inf }
 0x753   :  { %540 = vmax.xlane.f32.xlu2 %v539_v35 }
 0x7c6   :  { %v541_v36 = vpop.xlane.xlu2 %540 }
 0x7c7   :  { %v542_v37 = vsub.f32 %v536_v34, %v541_v36 }
 0x7c9   :  { %v543_v38 = vmul.f32 1.442695, %v542_v37 }
 0x7cb   :  { %617 = vpow2.f32 %v543_v38 }
 0x7d1   :  { %v618_v39 = vpop.eup %617 }
 0x7d2   :  { %v545_v40 = vsel %vm538_vm9, %v618_v39, 0.0 }
 0x7d3   :  { %546 = vadd.xlane.f32.xlu0 %v545_v40 }
 0x846   :  { %v547_v41 = vpop.xlane.xlu0 %546 }
 0x847   :  { %619 = vrcp.f32 %v547_v41  ;;  %v559_v45 = vand.u32 2147483648, %v547_v41  ;;  %v557_v47 = vand.u32 2147483647, %v547_v41  ;;  %vm553_vm10 = vweird.f32 %v547_v41 }
 0x849   :  { %v560_v49 = vor.u32 1.1754944e-38, %v559_v45  ;;  %vm558_vm13 = vcmp.eq.f32.partialorder %v557_v47, 8.507059e+37 }
 0x84d   :  { %v620_v42 = vpop.eup %619 }
 0x84e   :  { %v549_v43 = vmul.f32 %v620_v42, %v547_v41  ;;  %vm554_vm5 = vweird.f32 %v620_v42 }
 0x84f   :  { %vm555_vm12 = vmor %vm553_vm10, %vm554_vm5 }
 0x850   :  { %v550_v44 = vsub.f32 1.0, %v549_v43 }
 0x852   :  { %v551_v46 = vmul.f32 %v620_v42, %v550_v44 }
 0x854   :  { %v552_v48 = vadd.f32 %v620_v42, %v551_v46 }
 0x856   :  { %v556_v50 = vsel %vm555_vm12, %v620_v42, %v552_v48 }
 0x857   :  { %v561_v51 = vsel %vm558_vm13, %v560_v49, %v556_v50 }
 0x858   :  { %v562_v52 = vmul.f32 %v618_v39, %v561_v51 }
 0x85a   :  { %563 = vst.msk [vmem:[#allocation11] sm:$0x3] %vm538_vm9, %v562_v52 }
 0x85b   :  { %574 = dma.vmem_to_hbm [thread:$0]  %s570_s8, 32, %s572_s21, [#allocation5]  }
 0x85c   :  { %747 = dma.done.wait [#allocation5], 32  }
 0x85d   :  { %748 = vsyncadd [#allocation5], 4294967264 }
 0x85e   :  { %579 = vsyncpa [#allocation4], 1 }
 0x85f   :  { %580 = vsyncpa [#allocation7], 1 }
 0x860   :  { %581 = vsyncpa [#allocation10], 1 }
 0x861   :  { %582 = vsyncpa [#allocation5], 1 }

</bundles_post_ra>
